<compile_context>
chip_gen: v7x
topology: tpu7x:2x2x1
jax: 0.10.0
libtpu: 0.0.40
codegen_flags: <defaults>
</compile_context>

<pallas_src>
import functools

import jax
import jax.numpy as jnp
from jax.experimental import pallas as pl
from jax.experimental.pallas import tpu as pltpu


def _round_up(n: int, m: int) -> int:
    return ((n + m - 1) // m) * m


def _residual_block_kernel(x_ref, w1_ref, b1_ref, w2_ref, b2_ref, o_ref,
                           *, approximate_gelu: bool):
    # x_ref/o_ref: (C, tile_T) tiles (time in lanes).
    # w1: (H, C); b1: (H, 1); w2: (C, H); b2: (C, 1)  -- all VMEM-resident.
    x = x_ref[...].astype(jnp.float32)
    # approximate=True -> tanh GELU -> EUP slot (free vs the VALU); exact erf
    # kept behind the flag for bit-parity with PyTorch nn.GELU's default.
    h = jax.nn.gelu(x, approximate=approximate_gelu)            # nn.GELU
    h = (jnp.dot(w1_ref[...], h, preferred_element_type=jnp.float32,
                 precision=jax.lax.Precision.HIGHEST) + b1_ref[...])
    h = jax.nn.gelu(h, approximate=approximate_gelu)
    y = (jnp.dot(w2_ref[...], h, preferred_element_type=jnp.float32,
                 precision=jax.lax.Precision.HIGHEST) + b2_ref[...])
    # Residual add reuses the already-loaded x tile (resid == x, padding == 0).
    o_ref[...] = (y + x).astype(o_ref.dtype)
    # TODO(synk): for C < 8, fold a factor of time into sublanes for the
    # elementwise x-side stages and lower the C=4 contraction as VPU
    # broadcast-FMA (the (4, tile) tiles only fill half the sublanes); skipped
    # here since the H=32-row GELU dominates.


def residual_block(x_ct, w1, b1, w2, b2, *, tile_t: int = 512,
                   approximate_gelu: bool = True,
                   single_buffer_weights: bool = False):
    """conv2(gelu(conv1(gelu(x)))) + x for a [C, T] chunk (1x1 convs).

    x_ct: [C, T]; w1: [H, C]; b1: [H, 1]; w2: [C, H]; b2: [C, 1].
    Time is tiled along the lane dimension; the partial last block (and
    T < 128 chunks) are handled by Pallas masking -- no host-side padding.
    """
    C, T = x_ct.shape
    H = w1.shape[0]

    # Lane tile: multiple of 128, capped so larger chunks give >= ~4 grid
    # steps (both v7x TCs busy + double-buffered x/out DMA).  NOTE(v7x): for
    # large C/H re-derive the tile against the 64 MiB VMEM budget and set
    # pltpu.CompilerParams(vmem_limit_bytes=...) explicitly.
    if T <= 128:
        tile = T                      # single full-extent block
    else:
        tile = min(_round_up(tile_t, 128),
                   max(128, _round_up(pl.cdiv(T, 4), 128)))
    grid = (pl.cdiv(T, tile),)

    # Weights/biases are grid-invariant.  Optionally single-buffer them
    # (halves their VMEM footprint -- useful for large C/H on v7x); default
    # off since double-buffering is free at small sizes.
    if single_buffer_weights:
        def _wspec(shape):
            return pl.BlockSpec(shape, lambda i: (0, 0),
                                pipeline_mode=pl.Buffered(1))
    else:
        def _wspec(shape):
            return pl.BlockSpec(shape, lambda i: (0, 0))

    kernel = functools.partial(_residual_block_kernel,
                               approximate_gelu=approximate_gelu)

    return pl.pallas_call(
        kernel,
        out_shape=jax.ShapeDtypeStruct((C, T), x_ct.dtype),
        grid_spec=pltpu.PrefetchScalarGridSpec(
            num_scalar_prefetch=0,
            grid=grid,
            in_specs=[
                pl.BlockSpec((C, tile), lambda i: (0, i)),   # x (also residual)
                _wspec((H, C)),                              # W1 (resident)
                _wspec((H, 1)),                              # b1
                _wspec((C, H)),                              # W2
                _wspec((C, 1)),                              # b2
            ],
            out_specs=pl.BlockSpec((C, tile), lambda i: (0, i)),
        ),
        compiler_params=pltpu.CompilerParams(
            dimension_semantics=("parallel",)),
    )(x_ct, w1, b1, w2, b2)


class Residual1dStreamPallas:
    """JAX port of Residual1dStream for the GELU/Conv1d(1)/GELU/Conv1d(1) body."""

    def __init__(self, w1, b1, w2, b2, *, tile_t: int = 512,
                 approximate_gelu: bool = True):
        # Receptive-field math from the PyTorch __init__ (kernel_size=1, dilation=1).
        convs_kd = [(1, 1), (1, 1)]
        field = sum(d * (k - 1) for k, d in convs_kd) + 1
        self.padding = (field - 1) // 2          # == 0 for the 1x1-conv body
        # TODO(synk): inner nets with kernel_size > 1 (padding > 0) need a
        # windowed/buffered conv streamer; only the elementwise 1x1 body is
        # kernelized here.
        assert self.padding == 0
        self.w1, self.b1, self.w2, self.b2 = w1, b1, w2, b2
        # jit once: repeated same-shape streaming chunks reuse the compiled
        # executable.  For peak throughput feed chunks of a few hundred
        # columns per call (a T=16 chunk is dispatch/padding dominated).
        self._block = jax.jit(functools.partial(
            residual_block, tile_t=tile_t, approximate_gelu=approximate_gelu))
        self.x_buffer = []
        self.x_offset = 0

    def forward(self, x, final: bool = False):
        # x: [C, T]  (PyTorch streaming convention, no transposes needed).
        self.x_buffer.append(x)
        # Inner stream is elementwise (1x1 convs): it always emits a chunk of
        # identical length, so the residual bookkeeping below mirrors the
        # reference but (with padding == 0) the residual slab equals x itself.
        x_cat = (self.x_buffer[0] if len(self.x_buffer) == 1
                 else jnp.concatenate(self.x_buffer, axis=-1))
        self.x_buffer = []
        offset = max(min(self.padding - self.x_offset, x_cat.shape[-1]), 0)
        if offset > 0:
            x_cat = x_cat[..., offset:]
            self.x_offset = offset
        length = x.shape[-1]
        # Fused hot path: net(x) + residual in one Pallas kernel, single input.
        y = self._block(x, self.w1, self.b1, self.w2, self.b2)
        self.x_buffer.append(x_cat[..., length:])   # leftover (empty here)
        return y


if __name__ == "__main__":
    C, H, T = 4, 32, 16
    key = jax.random.PRNGKey(0)
    k1, k2, k3, k4, kx, kx2, kx3 = jax.random.split(key, 7)

    # Deterministic synthetic Conv1d parameters (PyTorch shapes):
    #   Conv1d(C, H, 1).weight: [H, C, 1], .bias: [H]
    #   Conv1d(H, C, 1).weight: [C, H, 1], .bias: [C]
    conv1_w = jax.random.normal(k1, (H, C, 1), jnp.float32) * 0.2
    conv1_b = jax.random.normal(k2, (H,), jnp.float32) * 0.1
    conv2_w = jax.random.normal(k3, (C, H, 1), jnp.float32) * 0.2
    conv2_b = jax.random.normal(k4, (C,), jnp.float32) * 0.1

    # Kernel-layout parameters ([H,C] @ [C,T] form -- no transposes needed).
    w1 = conv1_w[:, :, 0]            # (H, C)
    b1 = conv1_b[:, None]            # (H, 1)
    w2 = conv2_w[:, :, 0]            # (C, H)
    b2 = conv2_b[:, None]            # (C, 1)

    # Pure-JAX reference of Residual1d(Sequential(GELU, Conv1d(C,H,1), GELU, Conv1d(H,C,1))).
    def ref(x_ct, approximate):
        hi = jax.lax.Precision.HIGHEST
        h = jax.nn.gelu(x_ct, approximate=approximate)
        h = jax.nn.gelu(
            jnp.dot(w1, h, precision=hi) + b1, approximate=approximate)
        return jnp.dot(w2, h, precision=hi) + b2 + x_ct

    # 1) Streaming wrapper on small chunks ([C, T] = [4, 16]); default tanh
    #    GELU perf path; second chunk reuses the jitted executable.
    x = jax.random.normal(kx, (C, T), jnp.float32)
    stream = Residual1dStreamPallas(w1, b1, w2, b2)
    y = jax.block_until_ready(stream.forward(x, final=False))
    assert y.shape == x.shape and y.dtype == x.dtype
    assert jnp.allclose(y, ref(x, True), atol=1e-4, rtol=1e-4)

    xb = jax.random.normal(kx3, (C, T), jnp.float32)
    yb = jax.block_until_ready(stream.forward(xb, final=True))
    assert jnp.allclose(yb, ref(xb, True), atol=1e-4, rtol=1e-4)

    # 2) Direct kernel call on a longer chunk: multi-step grid (tile=128,
    #    grid=2) and the masked partial last block (no host-side padding).
    T2 = 200
    x2 = jax.random.normal(kx2, (C, T2), jnp.float32)
    y2 = jax.block_until_ready(residual_block(x2, w1, b1, w2, b2))
    assert y2.shape == x2.shape
    assert jnp.allclose(y2, ref(x2, True), atol=1e-4, rtol=1e-4)

    # 3) Exact-erf path (bit-parity with PyTorch nn.GELU default), flag-gated.
    y3 = jax.block_until_ready(
        residual_block(x2, w1, b1, w2, b2, approximate_gelu=False))
    assert jnp.allclose(y3, ref(x2, False), atol=1e-5, rtol=1e-5)

    print("KERNEL_OK")
</pallas_src>

<mosaic_0001>
module attributes {stable_mosaic.version = 11 : i64} {
  func.func @_residual_block_kernel(%arg0: i32, %arg1: memref<4x16xf32, #tpu.memory_space<vmem>>, %arg2: memref<32x4xf32, #tpu.memory_space<vmem>>, %arg3: memref<32x1xf32, #tpu.memory_space<vmem>>, %arg4: memref<4x32xf32, #tpu.memory_space<vmem>>, %arg5: memref<4x1xf32, #tpu.memory_space<vmem>>, %arg6: memref<4x16xf32, #tpu.memory_space<vmem>>) attributes {dimension_semantics = [#tpu.dimension_semantics<parallel>], iteration_bounds = array<i64: 1>, scalar_prefetch = 0 : i64, scratch_operands = 0 : i64, tpu.core_type = #tpu.core_type<tc>, window_params = [{transform_indices = @transform_0, window_bounds = array<i64: 4, 16>}, {pipeline_mode = #tpu.pipeline_mode<synchronous>, transform_indices = @transform_1, window_bounds = array<i64: 32, 4>}, {pipeline_mode = #tpu.pipeline_mode<synchronous>, transform_indices = @transform_2, window_bounds = array<i64: 32, 1>}, {pipeline_mode = #tpu.pipeline_mode<synchronous>, transform_indices = @transform_3, window_bounds = array<i64: 4, 32>}, {pipeline_mode = #tpu.pipeline_mode<synchronous>, transform_indices = @transform_4, window_bounds = array<i64: 4, 1>}, {transform_indices = @transform_5, window_bounds = array<i64: 4, 16>}]} {
    %c0 = arith.constant 0 : index
    %c0_0 = arith.constant 0 : index
    %0 = vector.load %arg1[%c0, %c0_0] : memref<4x16xf32, #tpu.memory_space<vmem>>, vector<4x16xf32>
    %1 = arith.mulf %0, %0 : vector<4x16xf32>
    %2 = arith.mulf %0, %1 : vector<4x16xf32>
    %cst = arith.constant 4.471500e-02 : f32
    %3 = vector.broadcast %cst : f32 to vector<4x16xf32>
    %4 = arith.mulf %3, %2 : vector<4x16xf32>
    %5 = arith.addf %0, %4 : vector<4x16xf32>
    %cst_1 = arith.constant 0.797884583 : f32
    %6 = vector.broadcast %cst_1 : f32 to vector<4x16xf32>
    %7 = arith.mulf %6, %5 : vector<4x16xf32>
    %8 = math.tanh %7 : vector<4x16xf32>
    %cst_2 = arith.constant 1.000000e+00 : f32
    %9 = vector.broadcast %cst_2 : f32 to vector<4x16xf32>
    %10 = arith.addf %9, %8 : vector<4x16xf32>
    %cst_3 = arith.constant 5.000000e-01 : f32
    %11 = vector.broadcast %cst_3 : f32 to vector<4x16xf32>
    %12 = arith.mulf %11, %10 : vector<4x16xf32>
    %13 = arith.mulf %0, %12 : vector<4x16xf32>
    %c0_4 = arith.constant 0 : index
    %c0_5 = arith.constant 0 : index
    %14 = vector.load %arg2[%c0_4, %c0_5] : memref<32x4xf32, #tpu.memory_space<vmem>>, vector<32x4xf32>
    %cst_6 = arith.constant dense<0.000000e+00> : vector<32x16xf32>
    %15 = tpu.matmul %14, %13, %cst_6 {dimension_numbers = #tpu.dot_dimension_numbers<[1], [0], [0], [1], [0, 0, 1, 1], [], []>, precision = #tpu.contract_precision<fp32>} : vector<32x4xf32>, vector<4x16xf32>, vector<32x16xf32> -> vector<32x16xf32>
    %c0_7 = arith.constant 0 : index
    %c0_8 = arith.constant 0 : index
    %16 = vector.load %arg3[%c0_7, %c0_8] : memref<32x1xf32, #tpu.memory_space<vmem>>, vector<32x1xf32>
    %17 = vector.broadcast %16 : vector<32x1xf32> to vector<32x16xf32>
    %18 = arith.addf %15, %17 : vector<32x16xf32>
    %19 = arith.mulf %18, %18 : vector<32x16xf32>
    %20 = arith.mulf %18, %19 : vector<32x16xf32>
    %cst_9 = arith.constant 4.471500e-02 : f32
    %21 = vector.broadcast %cst_9 : f32 to vector<32x16xf32>
    %22 = arith.mulf %21, %20 : vector<32x16xf32>
    %23 = arith.addf %18, %22 : vector<32x16xf32>
    %cst_10 = arith.constant 0.797884583 : f32
    %24 = vector.broadcast %cst_10 : f32 to vector<32x16xf32>
    %25 = arith.mulf %24, %23 : vector<32x16xf32>
    %26 = math.tanh %25 : vector<32x16xf32>
    %cst_11 = arith.constant 1.000000e+00 : f32
    %27 = vector.broadcast %cst_11 : f32 to vector<32x16xf32>
    %28 = arith.addf %27, %26 : vector<32x16xf32>
    %cst_12 = arith.constant 5.000000e-01 : f32
    %29 = vector.broadcast %cst_12 : f32 to vector<32x16xf32>
    %30 = arith.mulf %29, %28 : vector<32x16xf32>
    %31 = arith.mulf %18, %30 : vector<32x16xf32>
    %c0_13 = arith.constant 0 : index
    %c0_14 = arith.constant 0 : index
    %32 = vector.load %arg4[%c0_13, %c0_14] : memref<4x32xf32, #tpu.memory_space<vmem>>, vector<4x32xf32>
    %cst_15 = arith.constant dense<0.000000e+00> : vector<4x16xf32>
    %33 = tpu.matmul %32, %31, %cst_15 {dimension_numbers = #tpu.dot_dimension_numbers<[1], [0], [0], [1], [0, 0, 1, 1], [], []>, precision = #tpu.contract_precision<fp32>} : vector<4x32xf32>, vector<32x16xf32>, vector<4x16xf32> -> vector<4x16xf32>
    %c0_16 = arith.constant 0 : index
    %c0_17 = arith.constant 0 : index
    %34 = vector.load %arg5[%c0_16, %c0_17] : memref<4x1xf32, #tpu.memory_space<vmem>>, vector<4x1xf32>
    %35 = vector.broadcast %34 : vector<4x1xf32> to vector<4x16xf32>
    %36 = arith.addf %33, %35 : vector<4x16xf32>
    %37 = arith.addf %36, %0 : vector<4x16xf32>
    %c0_18 = arith.constant 0 : index
    %c0_19 = arith.constant 0 : index
    %38 = vector.load %arg6[%c0_18, %c0_19] : memref<4x16xf32, #tpu.memory_space<vmem>>, vector<4x16xf32>
    tpu.vector_store %arg6[%c0_18, %c0_19], %37 {strides = array<i32>} : memref<4x16xf32, #tpu.memory_space<vmem>>, vector<4x16xf32>,
    return
  }
  func.func @transform_0(%arg0: i32) -> (i32, i32) {
    %c0_i32 = arith.constant 0 : i32
    %c0_i32_0 = arith.constant 0 : i32
    return %c0_i32, %arg0 : i32, i32
  }
  func.func @transform_1(%arg0: i32) -> (i32, i32) {
    %c0_i32 = arith.constant 0 : i32
    %c0_i32_0 = arith.constant 0 : i32
    %c0_i32_1 = arith.constant 0 : i32
    return %c0_i32, %c0_i32_0 : i32, i32
  }
  func.func @transform_2(%arg0: i32) -> (i32, i32) {
    %c0_i32 = arith.constant 0 : i32
    %c0_i32_0 = arith.constant 0 : i32
    %c0_i32_1 = arith.constant 0 : i32
    return %c0_i32, %c0_i32_0 : i32, i32
  }
  func.func @transform_3(%arg0: i32) -> (i32, i32) {
    %c0_i32 = arith.constant 0 : i32
    %c0_i32_0 = arith.constant 0 : i32
    %c0_i32_1 = arith.constant 0 : i32
    return %c0_i32, %c0_i32_0 : i32, i32
  }
  func.func @transform_4(%arg0: i32) -> (i32, i32) {
    %c0_i32 = arith.constant 0 : i32
    %c0_i32_0 = arith.constant 0 : i32
    %c0_i32_1 = arith.constant 0 : i32
    return %c0_i32, %c0_i32_0 : i32, i32
  }
  func.func @transform_5(%arg0: i32) -> (i32, i32) {
    %c0_i32 = arith.constant 0 : i32
    %c0_i32_0 = arith.constant 0 : i32
    return %c0_i32, %arg0 : i32, i32
  }
}

</mosaic_0001>

<bundles_post_ra>
// kernel: residual_block.1
= control target key start
LH: loop header
LB: loop body
LE: loop exit
PB: predicated region body
PF: predicated region fallthrough
CT: control target
= control target key end

     0   :  { %vm59_vm0 = vcmask 31744   ;;  %v1475_v6 = vmov 0   ;;  %s1613_s0 = inlined_call_operand.vmem [shape: f32[4,16], index: 0, kind: input, shape index: {}]   ;;  %s1614_s1 = inlined_call_operand.vmem [shape: f32[32,4], index: 1, kind: input, shape index: {}]   ;;  %s1615_s2 = inlined_call_operand.vmem [shape: f32[32,1], index: 2, kind: input, shape index: {}]   ;;  %s1616_s3 = inlined_call_operand.vmem [shape: f32[4,32], index: 3, kind: input, shape index: {}]   ;;  %s1617_s4 = inlined_call_operand.vmem [shape: f32[4,1], index: 4, kind: input, shape index: {}]   ;;  %s1618_s5 = inlined_call_operand.hbm [shape: f32[4,16], index: 5, kind: output, shape index: {}]  }
   0x1   :  { %v1513_v0 = vld [vmem:[%s1613_s0] sm:$0xf]  ;;  %1439 = vset.pattern.permute.xlu0 %v1475_v6  ;;  %1440 = vset.pattern.permute.xlu1 %v1475_v6  ;;  %v37_v7 = vld [vmem:[%s1615_s2 + $0x10] sm:$0xff]  ;;  %v36_v10 = vld [vmem:[%s1615_s2 + $0x8] sm:$0xff] }
   0x2   :  { %v31_v1 = vld [vmem:[%s1614_s1] sm:$0xff]  ;;  %v22_v2 = vmul.f32 %v1513_v0, %v1513_v0  ;;  %51 = vperm.xlu1 %1440, %v37_v7   ;;  %v38_v11 = vld [vmem:[%s1615_s2 + $0x18] sm:$0xff] }
   0x3   :  { %v61_v3 = vsel %vm59_vm0, %v31_v1, 0  ;;  %v35_v4 = vld [vmem:[%s1615_s2] sm:$0xff] }
   0x4   :  { %v1524_v5 = vand.u32 4294901760, %v61_v3  ;;  %v23_v8 = vmul.f32 %v22_v2, %v1513_v0  ;;  %41 = vperm.xlu0 %1439, %v35_v4  }
   0x6   :  { %v1531_v9 = vsub.f32 %v61_v3, %v1524_v5 }
   0x7   :  { %10 = vsyncpa [#allocation3], 0  ;;  %v24_v12 = vmul.f32 0.044715, %v23_v8  ;;  %v32_v15 = vld [vmem:[%s1614_s1 + $0x8] sm:$0xff]  ;;  %56 = vperm.xlu1 %1440, %v38_v11   ;;  %v33_v17 = vld [vmem:[%s1614_s1 + $0x10] sm:$0xff] }
   0x8   :  { %v144_v13 = vand.u32 4294901760, %v1531_v9  ;;  %46 = vperm.xlu0 %1439, %v36_v10   ;;  %v688_v18 = vld [vmem:[%s1617_s4] sm:$0xf]  ;;  %v64_v21 = vsel %vm59_vm0, %v32_v15, 0  ;;  %v67_v22 = vsel %vm59_vm0, %v33_v17, 0  ;;  %v34_v23 = vld [vmem:[%s1614_s1 + $0x18] sm:$0xff] }
   0x9   :  { %v25_v14 = vadd.f32 %v24_v12, %v1513_v0  ;;  %v152_v24 = vand.u32 4294901760, %v64_v21  ;;  %v162_v25 = vand.u32 4294901760, %v67_v22  ;;  %v70_v26 = vsel %vm59_vm0, %v34_v23, 0 }
   0xa   :  { %v145_v16 = vsub.f32 %v1531_v9, %v144_v13  ;;  %v172_v28 = vand.u32 4294901760, %v70_v26  ;;  %vm72_vm1 = vcmask 1043456   ;;  %v1476_v50 = vmov 0.0|0.0  }
   0xb   :  { %v26_v19 = vmul.f32 0.7978846, %v25_v14  ;;  %v153_v27 = vsub.f32 %v64_v21, %v152_v24  ;;  %v163_v29 = vsub.f32 %v67_v22, %v162_v25  ;;  %1374 = vmatprep.subr.bf16.mxu1 %v1476_v50  ;;  %vm1477_vm2 = vmmov 0   ;;  %v687_v21 = vld [vmem:[%s1616_s3] sm:$0xf]  ;;  %s1479_s3 = smov [#allocation2]  }
   0xc   :  { %v146_v20 = vand.u32 4294901760, %v145_v16  ;;  %691 = vperm.xlu0 %1439, %v688_v18   ;;  %v173_v32 = vsub.f32 %v70_v26, %v172_v28  ;;  %v1478_v51 = vmov 0.0   ;;  %vm694_vm3 = vcmask 261120   ;;  %s1192_s11 = sshll.u32 %s1479_s3, 4  ;;  %s1193_s11 = int_to_ptr.vmem [resolvable:$true] %s1192_s11 }
   0xd   :  { %1441 = vtanh.f32 %v26_v19  ;;  %v154_v31 = vand.u32 4294901760, %v153_v27  ;;  %v164_v34 = vand.u32 4294901760, %v163_v29  ;;  %1316 = vmatprep.mubr.msk.f32.mxu1 %vm1477_vm2, %v1478_v51  ;;  %v696_v22 = vsel %vm694_vm3, %v687_v21, 0  ;;  %s1451_s12 = scalar_lea.vmem %s1193_s11, 64  ;;  %p1456_p1 = scmp.lt.s32.totalorder %s1193_s11, %s1193_s11 }
   0xe   :  { %1262 = vmatprep.mubr.f32.mxu0 %v146_v20  ;;  %v174_v37 = vand.u32 4294901760, %v173_v32  ;;  %v1568_v23 = vand.u32 4294901760, %v696_v22  ;;  %vm1184_vm4 = vcmask 125952   ;;  %p1452_p0 = scmp.ne.s32.totalorder %s1193_s11, %s1451_s12  ;;  %p1457_p2 = scmp.lt.s32.totalorder %s1451_s12, %s1451_s12 }
   0xf   :  { %v155_v36 = vsub.f32 %v153_v27, %v154_v31  ;;  %v165_v39 = vsub.f32 %v163_v29, %v164_v34 }
  0x10   :  { %v175_v43 = vsub.f32 %v173_v32, %v174_v37  ;;  %p1458_p3 = por %p1457_p2, %p1456_p1 }
  0x11   :  { %v156_v42 = vand.u32 4294901760, %v155_v36  ;;  %v166_v44 = vand.u32 4294901760, %v165_v39 }
  0x12   :  { %v176_v46 = vand.u32 4294901760, %v175_v43  ;;  %p1459_p4 = pnand %p1458_p3, %p1452_p0 }
  0x17   :  { %v1442_v30 = vpop.eup %1441 }
  0x18   :  { %v28_v33 = vadd.f32 1.0, %v1442_v30 }
  0x1a   :  { %v29_v35 = vmul.f32 0.5, %v28_v33 }
  0x1c   :  { %v30_v38 = vmul.f32 %v29_v35, %v1513_v0 }
  0x1e   :  { %v74_v40 = vsel %vm72_vm1, %v30_v38, 0 }
  0x1f   :  { %v77_v41 = vand.u32 4294901760, %v74_v40 }
  0x21   :  { %1260 = vmatprep.subr.mxu0 %v77_v41  ;;  %v184_v45 = vsub.f32 %v74_v40, %v77_v41 }
  0x22   :  { %1261 = vmatpush3.msra.mxu0 %v77_v41 }
  0x23   :  { %1263 = vmatmul.mubr.f32.vlgmr.msra.gmra.mrb[0].mxu0 %v156_v42  ;;  %v185_v47 = vand.u32 4294901760, %v184_v45 }
  0x24   :  { %1265 = vmatprep.mubr.f32.mxu0 %v166_v44 }
  0x25   :  { %v186_v48 = vsub.f32 %v184_v45, %v185_v47 }
  0x27   :  { %1266 = vmatmul.mubr.f32.gmra.mrb[2].mxu0 %v176_v46  ;;  %v187_v49 = vand.u32 4294901760, %v186_v48 }
  0x28   :  { %1270 = vmatprep.mubr.f32.mxu0 %v1524_v5 }
  0x29   :  { %1268 = vmatprep.subr.mxu0 %v187_v49 }
  0x2a   :  { %1269 = vmatpush3.msra.mxu0 %v187_v49 }
  0x2b   :  { %1271 = vmatmul.mubr.f32.vlgmr.msra.gmra.mrb[0].mxu0 %v152_v24  ;;  %1276 = vmatprep.subr.mxu0 %v184_v45 }
  0x2c   :  { %1273 = vmatprep.mubr.f32.mxu0 %v162_v25  ;;  %1277 = vmatpush3.msra.mxu0 %v184_v45 }
  0x2d   :  { %1284 = vmatprep.subr.mxu0 %v77_v41 }
  0x2f   :  { %1274 = vmatmul.mubr.f32.gmra.mrb[2].mxu0 %v172_v28 }
  0x30   :  { %1278 = vmatprep.mubr.f32.mxu0 %v1531_v9 }
  0x33   :  { %1279 = vmatmul.mubr.f32.vlgmr.msra.gmra.mrb[0].mxu0 %v153_v27 }
  0x34   :  { %1281 = vmatprep.mubr.f32.mxu0 %v163_v29  ;;  %1285 = vmatpush3.msra.mxu0 %v77_v41  ;;  %v1571_v29 = vsub.f32 %v696_v22, %v1568_v23 }
  0x35   :  { %1292 = vmatprep.subr.mxu0 %v185_v47 }
  0x36   :  { %v769_v39 = vand.u32 4294901760, %v1571_v29 }
  0x37   :  { %1282 = vmatmul.mubr.f32.gmra.mrb[2].mxu0 %v173_v32 }
  0x38   :  { %1286 = vmatprep.mubr.f32.mxu0 %v144_v13  ;;  %v770_v48 = vsub.f32 %v1571_v29, %v769_v39 }
  0x3b   :  { %1287 = vmatmul.mubr.f32.vlgmr.msra.gmra.mrb[0].mxu0 %v154_v31 }
  0x3c   :  { %1289 = vmatprep.mubr.f32.mxu0 %v164_v34  ;;  %1293 = vmatpush3.msra.mxu0 %v185_v47 }
  0x3d   :  { %1300 = vmatprep.subr.mxu0 %v77_v41 }
  0x3f   :  { %1290 = vmatmul.mubr.f32.gmra.mrb[2].mxu0 %v174_v37 }
  0x40   :  { %1294 = vmatprep.mubr.f32.mxu0 %v1524_v5 }
  0x43   :  { %1295 = vmatmul.mubr.f32.vlgmr.msra.gmra.mrb[0].mxu0 %v152_v24 }
  0x44   :  { %1297 = vmatprep.mubr.f32.mxu0 %v162_v25  ;;  %1301 = vmatpush3.msra.mxu0 %v77_v41 }
  0x47   :  { %1298 = vmatmul.mubr.f32.gmra.mrb[2].mxu0 %v172_v28 }
  0x48   :  { %1302 = vmatprep.mubr.f32.mxu0 %v1524_v5 }
  0x4b   :  { %1303 = vmatmul.mubr.f32.vlgmr.msra.gmra.mrb[0].mxu0 %v152_v24 }
  0x4c   :  { %1305 = vmatprep.mubr.f32.mxu0 %v162_v25 }
  0x4f   :  { %1306 = vmatmul.mubr.f32.gmra.mrb[2].mxu0 %v172_v28 }
  0x81   :  { %v52_v53 = vpop.permute.xlu1 %51 }
  0x83   :  { %v42_v52 = vpop.permute.xlu0 %41 }
  0x86   :  { %v57_v61 = vpop.permute.xlu1 %56 }
  0x87   :  { %v47_v54 = vpop.permute.xlu0 %46 }
 0x11e   :  { %v1304_v55 = vpop.f32.mrb[0].mxu0 }
 0x11f   :  { %v1410_v56 = vadd.f32 %v1304_v55, %v47_v54  ;;  %v629_v57 = vpop.f32.mrb[1].mxu0 }
 0x120   :  { %v1411_v58 = vadd.f32 %v629_v57, %v42_v52 }
 0x121   :  { %v652_v59 = vmul.f32 %v1410_v56, %v1410_v56 }
 0x122   :  { %v651_v60 = vmul.f32 %v1411_v58, %v1411_v58  ;;  %v1307_v62 = vpop.f32.mrb[2].mxu0 }
 0x123   :  { %v656_v63 = vmul.f32 %v1410_v56, %v652_v59  ;;  %v1412_v1 = vadd.f32 %v1307_v62, %v57_v61  ;;  %v641_v2 = vpop.f32.mrb[3].mxu0  ;;  %v771_v61 = vand.u32 4294901760, %v770_v48 }
 0x124   :  { %v655_v3 = vmul.f32 %v1411_v58, %v651_v60  ;;  %v1413_v4 = vadd.f32 %v641_v2, %v52_v53 }
 0x125   :  { %v660_v5 = vmul.f32 0.044715, %v656_v63  ;;  %v654_v6 = vmul.f32 %v1412_v1, %v1412_v1 }
 0x126   :  { %v659_v7 = vmul.f32 0.044715, %v655_v3  ;;  %v653_v8 = vmul.f32 %v1413_v4, %v1413_v4 }
 0x127   :  { %v664_v9 = vadd.f32 %v1410_v56, %v660_v5  ;;  %v658_v10 = vmul.f32 %v1412_v1, %v654_v6 }
 0x128   :  { %v663_v11 = vadd.f32 %v1411_v58, %v659_v7  ;;  %v657_v12 = vmul.f32 %v1413_v4, %v653_v8 }
 0x129   :  { %v668_v13 = vmul.f32 0.7978846, %v664_v9  ;;  %v662_v14 = vmul.f32 0.044715, %v658_v10 }
 0x12a   :  { %v667_v15 = vmul.f32 0.7978846, %v663_v11  ;;  %v661_v16 = vmul.f32 0.044715, %v657_v12 }
 0x12b   :  { %1443 = vtanh.f32 %v668_v13  ;;  %v666_v17 = vadd.f32 %v1412_v1, %v662_v14  ;;  %v692_v13 = vpop.permute.xlu0 %691 }
 0x12c   :  { %1445 = vtanh.f32 %v667_v15  ;;  %v665_v18 = vadd.f32 %v1413_v4, %v661_v16 }
 0x12d   :  { %v670_v19 = vmul.f32 0.7978846, %v666_v17 }
 0x12e   :  { %v669_v20 = vmul.f32 0.7978846, %v665_v18 }
 0x12f   :  { %1447 = vtanh.f32 %v670_v19 }
 0x130   :  { %1449 = vtanh.f32 %v669_v20 }
 0x135   :  { %v1444_v24 = vpop.eup %1443 }
 0x136   :  { %v1446_v25 = vpop.eup %1445  ;;  %v676_v26 = vadd.f32 1.0, %v1444_v24 }
 0x137   :  { %v675_v27 = vadd.f32 1.0, %v1446_v25 }
 0x138   :  { %v680_v28 = vmul.f32 0.5, %v676_v26 }
 0x139   :  { %v1448_v30 = vpop.eup %1447  ;;  %v679_v31 = vmul.f32 0.5, %v675_v27 }
 0x13a   :  { %v1450_v32 = vpop.eup %1449  ;;  %v684_v33 = vmul.f32 %v1410_v56, %v680_v28  ;;  %v678_v34 = vadd.f32 1.0, %v1448_v30 }
 0x13b   :  { %v683_v35 = vmul.f32 %v1411_v58, %v679_v31  ;;  %v677_v36 = vadd.f32 1.0, %v1450_v32 }
 0x13c   :  { %v702_v37 = vand.u32 4294901760, %v684_v33  ;;  %v682_v38 = vmul.f32 0.5, %v678_v34 }
 0x13d   :  { %v699_v40 = vand.u32 4294901760, %v683_v35  ;;  %v681_v41 = vmul.f32 0.5, %v677_v36 }
 0x13e   :  { %v786_v42 = vsub.f32 %v684_v33, %v702_v37  ;;  %v686_v43 = vmul.f32 %v1412_v1, %v682_v38 }
 0x13f   :  { %v1375_v44 = vpack.c.bf16 %v702_v37, %v699_v40  ;;  %v779_v45 = vsub.f32 %v683_v35, %v699_v40  ;;  %v685_v46 = vmul.f32 %v1413_v4, %v681_v41 }
 0x140   :  { %v708_v47 = vand.u32 4294901760, %v686_v43  ;;  %v787_v49 = vand.u32 4294901760, %v786_v42 }
 0x141   :  { %1376 = vmatpush3.bf16.msra.mxu1 %v1375_v44  ;;  %v705_v52 = vand.u32 4294901760, %v685_v46  ;;  %v780_v53 = vand.u32 4294901760, %v779_v45  ;;  %v1387_v54 = vpack.c.bf16 %v786_v42, %v779_v45 }
 0x142   :  { %1377 = vmatprep.subr.bf16.mxu1 %v1476_v50  ;;  %v800_v55 = vsub.f32 %v686_v43, %v708_v47  ;;  %v788_v56 = vsub.f32 %v786_v42, %v787_v49 }
 0x143   :  { %v1378_v57 = vpack.c.bf16 %v708_v47, %v705_v52  ;;  %v793_v58 = vsub.f32 %v685_v46, %v705_v52  ;;  %v781_v59 = vsub.f32 %v779_v45, %v780_v53  ;;  %v1399_v60 = vpack.c.bf16 %v787_v49, %v780_v53 }
 0x144   :  { %v789_v62 = vand.u32 4294901760, %v788_v56  ;;  %v801_v63 = vand.u32 4294901760, %v800_v55 }
 0x145   :  { %1379 = vmatpush3.bf16.msra.mxu1 %v1378_v57  ;;  %v782_v1 = vand.u32 4294901760, %v781_v59  ;;  %v794_v2 = vand.u32 4294901760, %v793_v58  ;;  %v1390_v3 = vpack.c.bf16 %v800_v55, %v793_v58 }
 0x146   :  { %1380 = vmatprep.subr.bf16.mxu1 %v1476_v50  ;;  %v802_v4 = vsub.f32 %v800_v55, %v801_v63 }
 0x147   :  { %v1381_v5 = vpack.c.bf16 %v789_v62, %v782_v1  ;;  %v795_v6 = vsub.f32 %v793_v58, %v794_v2  ;;  %v1402_v7 = vpack.c.bf16 %v801_v63, %v794_v2 }
 0x148   :  { %1317 = vmatmul.mubr.f32.vlgmr.msra.gmra.mrb[0].mxu1 %v771_v61  ;;  %v803_v8 = vand.u32 4294901760, %v802_v4 }
 0x149   :  { %1382 = vmatpush3.bf16.msra.mxu1 %v1381_v5  ;;  %v796_v9 = vand.u32 4294901760, %v795_v6  ;;  %1327 = vmatprep.mubr.msk.f32.mxu1 %vm1477_vm2, %v1478_v51 }
 0x14a   :  { %1383 = vmatprep.subr.bf16.mxu1 %v1476_v50 }
 0x14b   :  { %v1384_v10 = vpack.c.bf16 %v803_v8, %v796_v9 }
 0x14d   :  { %1385 = vmatpush3.bf16.msra.mxu1 %v1384_v10 }
 0x14e   :  { %1386 = vmatprep.subr.bf16.mxu1 %v1476_v50 }
 0x150   :  { %1328 = vmatmul.mubr.f32.vlgmr.msra.gmra.mrb[2].mxu1 %v1568_v23 }
 0x151   :  { %1388 = vmatpush3.bf16.msra.mxu1 %v1387_v54  ;;  %1338 = vmatprep.mubr.msk.f32.mxu1 %vm1477_vm2, %v1478_v51 }
 0x152   :  { %1389 = vmatprep.subr.bf16.mxu1 %v1476_v50 }
 0x155   :  { %1391 = vmatpush3.bf16.msra.mxu1 %v1390_v3 }
 0x156   :  { %1392 = vmatprep.subr.bf16.mxu1 %v1476_v50 }
 0x158   :  { %1339 = vmatmul.mubr.f32.vlgmr.msra.gmra.mrb[4].mxu1 %v1571_v29 }
 0x159   :  { %1394 = vmatpush3.bf16.msra.mxu1 %v1375_v44  ;;  %1349 = vmatprep.mubr.msk.f32.mxu1 %vm1477_vm2, %v1478_v51 }
 0x15a   :  { %1395 = vmatprep.subr.bf16.mxu1 %v1476_v50 }
 0x15d   :  { %1397 = vmatpush3.bf16.msra.mxu1 %v1378_v57 }
 0x15e   :  { %1398 = vmatprep.subr.bf16.mxu1 %v1476_v50 }
 0x160   :  { %1350 = vmatmul.mubr.f32.vlgmr.msra.gmra.mrb[6].mxu1 %v769_v39 }
 0x161   :  { %1400 = vmatpush3.bf16.msra.mxu1 %v1399_v60  ;;  %1360 = vmatprep.mubr.msk.f32.mxu1 %vm1477_vm2, %v1478_v51 }
 0x162   :  { %1401 = vmatprep.subr.bf16.mxu1 %v1476_v50 }
 0x165   :  { %1403 = vmatpush3.bf16.msra.mxu1 %v1402_v7 }
 0x166   :  { %1404 = vmatprep.subr.bf16.mxu1 %v1476_v50 }
 0x168   :  { %1361 = vmatmul.mubr.f32.vlgmr.msra.gmra.mrb[8].mxu1 %v1568_v23 }
 0x169   :  { %1406 = vmatpush3.bf16.msra.mxu1 %v1375_v44  ;;  %1371 = vmatprep.mubr.msk.f32.mxu1 %vm1477_vm2, %v1478_v51 }
 0x16a   :  { %1407 = vmatprep.subr.bf16.mxu1 %v1476_v50 }
 0x16d   :  { %1409 = vmatpush3.bf16.msra.mxu1 %v1378_v57 }
 0x170   :  { %1372 = vmatmul.mubr.f32.vlgmr.msra.gmra.mrb[10].mxu1 %v1568_v23 }
 0x21b   :  { %v773_v11 = vpop.f32.mrb[0].mxu1 }
 0x21c   :  { %v1318_v12 = vpop.f32.mrb[1].mxu1  ;;  %v774_v14 = vadd.f32 %v773_v11, %v692_v13 }
 0x223   :  { %v864_v15 = vpop.f32.mrb[2].mxu1 }
 0x224   :  { %v865_v16 = vadd.f32 %v864_v15, %v774_v14  ;;  %v1329_v17 = vpop.f32.mrb[3].mxu1 }
 0x22b   :  { %v944_v18 = vpop.f32.mrb[4].mxu1 }
 0x22c   :  { %v945_v19 = vadd.f32 %v944_v18, %v865_v16  ;;  %v1340_v20 = vpop.f32.mrb[5].mxu1 }
 0x233   :  { %v1021_v21 = vpop.f32.mrb[6].mxu1 }
 0x234   :  { %v1022_v22 = vadd.f32 %v1021_v21, %v945_v19  ;;  %v1351_v24 = vpop.f32.mrb[7].mxu1 }
 0x23b   :  { %v1104_v25 = vpop.f32.mrb[8].mxu1 }
 0x23c   :  { %v1105_v51 = vadd.f32 %v1104_v25, %v1022_v22  ;;  %v1362_v26 = vpop.f32.mrb[9].mxu1 }
 0x243   :  { %v1179_v50 = vpop.f32.mrb[10].mxu1 }
 0x244   :  { %v1180_v23 = vadd.f32 %v1179_v50, %v1105_v51  ;;  %v1373_v27 = vpop.f32.mrb[11].mxu1 }
 0x246   :  { %v1183_v28 = vadd.f32 %v1180_v23, %v1513_v0 }
 0x248   :  { %1185 = vst.msk [vmem:[#allocation2] sm:$0xf] %vm1184_vm4, %v1183_v28 }
 0x249   :  { %1462 = shalt.err (!%p1459_p4)
}
 0x24a   :  { %s1463_s15 = scalar_lea.hbm %s1618_s5, 64 }
 0x24b   :  { %p1464_p5 = scmp.ne.s32.totalorder %s1618_s5, %s1463_s15  ;;  %p1467_p6 = scmp.lt.u32.totalorder %s1463_s15, %s1618_s5 }
 0x24d   :  { %p1469_p7 = pnand %p1467_p6, %p1464_p5 }
 0x24f   :  { %1472 = shalt.err (!%p1469_p7)
}
 0x250   :  { %1195 = dma.vmem_to_hbm [thread:$0]  %s1193_s11, 64, %s1618_s5, [#allocation3]  }
 0x251   :  { %1473 = dma.done.wait [#allocation3], 64  }
 0x252   :  { %1474 = vsyncadd [#allocation3], 4294967232 }
 0x253   :  { %1199 = vsyncpa [#allocation3], 1 }

</bundles_post_ra>
